<compile_context>
chip_gen: v7x
topology: tpu7x:2x2x1
jax: 0.10.0
libtpu: 0.0.40
codegen_flags: <defaults>
</compile_context>

<pallas_src>
import functools
import math

import jax
import jax.numpy as jnp
from jax.experimental import pallas as pl
from jax.experimental.pallas import tpu as pltpu


def _eca_kernel(w_ref, x_ref, o_ref, *, pad, inv_hw):
    # w_ref: (k,) f32 conv weights in SMEM (scalar reads)
    # x_ref / o_ref: (Bt, C, HW) VMEM tiles (lane-dense trailing axis)
    x = x_ref[...]                                           # native dtype
    C = x.shape[1]

    # Global average pool over the lane-dense spatial axis (f32 accumulate).
    pooled = jnp.sum(x.astype(jnp.float32), axis=-1) * inv_hw        # (Bt, C)

    # k-tap zero-padded 1-D conv along channels:
    #   y[c] = sum_{d=-pad..pad} w[pad + d] * pooled[c + d]   (0 outside [0,C))
    # Taps are gathered with XLU rolls of the tiny pooled vector; a rolled
    # iota tells us which source channel landed in each slot, so the edge
    # zero-padding falls out of the same mask (no jnp.pad relayout).
    ch = jax.lax.broadcasted_iota(jnp.int32, pooled.shape, dimension=1)
    acc = w_ref[pad] * pooled                                # center tap
    for j in range(1, pad + 1):
        for amt in sorted({j % C, (C - j) % C}):
            vals = pltpu.roll(pooled, shift=amt, axis=1)
            src = pltpu.roll(ch, shift=amt, axis=1)          # source channel idx
            acc = acc + jnp.where(src == ch + j, w_ref[pad + j] * vals, 0.0)
            acc = acc + jnp.where(src == ch - j, w_ref[pad - j] * vals, 0.0)

    att = jax.nn.sigmoid(acc)                                # (Bt, C) f32

    # Broadcast channel attention over the spatial lanes; multiply in the
    # input's native dtype (no blanket f32 up-cast of the big block).
    o_ref[...] = (x * att.astype(x.dtype)[:, :, None]).astype(o_ref.dtype)


def _pick_batch_tile(B, slab_bytes, budget_bytes):
    """Largest batch-tile whose double-buffered (in + out) blocks fit budget."""
    per_batch = 4 * max(slab_bytes, 1)          # 2 bufs x (input + output)
    bt = max(1, min(B, budget_bytes // per_batch))
    if B >= 2:                                  # keep >= 2 grid steps (v7x megacore)
        bt = min(bt, max(1, B // 2))
    while B % bt:                               # divisor of B -> no ragged blocks
        bt -= 1
    return bt


def eca_forward(x, w, *, vmem_block_budget_bytes=24 << 20, vmem_limit_bytes=None):
    """ECA forward.  x: (B, C, H, W), w: (k,) Conv1d weight (no bias).

    `vmem_block_budget_bytes` bounds the double-buffered block footprint; the
    24 MiB default fits the 32 MiB scoped-VMEM default on all generations
    (v7x has 64 MiB physical). On v6e/v5e you may raise both the budget and
    `vmem_limit_bytes` to use bigger blocks.
    """
    B, C, H, W = x.shape
    HW = H * W
    k = int(w.shape[0])
    pad = (k - 1) // 2

    # Lane-dense layout: collapse spatial dims into the trailing axis.
    x2 = x.reshape(B, C, HW)

    bt = _pick_batch_tile(B, C * HW * x.dtype.itemsize, vmem_block_budget_bytes)
    # TODO(synk): if a single (1, C, H*W) slab ever exceeds the VMEM budget,
    # split along C with a (k-1)//2-channel halo to keep single-pass HBM traffic.

    kernel = functools.partial(_eca_kernel, pad=pad, inv_hw=1.0 / HW)
    out2 = pl.pallas_call(
        kernel,
        out_shape=jax.ShapeDtypeStruct((B, C, HW), x.dtype),
        grid=(B // bt,),
        in_specs=[
            pl.BlockSpec(memory_space=pltpu.MemorySpace.SMEM),   # conv weights
            pl.BlockSpec((bt, C, HW), lambda b: (b, 0, 0)),      # x block
        ],
        out_specs=pl.BlockSpec((bt, C, HW), lambda b: (b, 0, 0)),
        input_output_aliases={1: 0},            # output may reuse x2's buffer
        compiler_params=pltpu.CompilerParams(
            dimension_semantics=("parallel",),
            vmem_limit_bytes=vmem_limit_bytes),
    )(w.astype(jnp.float32), x2)
    return out2.reshape(B, C, H, W)


def eca_reference(x, w):
    """Pure-JAX reference matching the PyTorch forward (for validation)."""
    B, C, H, W = x.shape
    k = w.shape[0]
    pad = (k - 1) // 2
    pooled = jnp.mean(x, axis=(2, 3))                         # (B, C)
    yp = jnp.pad(pooled, ((0, 0), (pad, pad)))
    conv = jnp.zeros_like(pooled)
    for j in range(k):
        conv = conv + w[j] * yp[:, j:j + C]
    att = jax.nn.sigmoid(conv)
    return x * att[:, :, None, None]


if __name__ == "__main__":
    # Module config: channel=16, b=1, gamma=2 -> ECA kernel_size formula
    B, C, H, W = 2, 16, 16, 16
    b_, gamma = 1, 2
    kernel_size = int(abs((math.log(C, 2) + b_) / gamma))
    kernel_size = kernel_size if kernel_size % 2 else kernel_size + 1  # -> 3

    key = jax.random.PRNGKey(0)
    kx, kw = jax.random.split(key)
    x = jax.random.normal(kx, (B, C, H, W), dtype=jnp.float32)

    # Deterministic Conv1d weight init (PyTorch default: U(-1/sqrt(fan_in), +)),
    # fan_in = in_channels * kernel_size = kernel_size here.
    bound = 1.0 / math.sqrt(kernel_size)
    w = jax.random.uniform(kw, (kernel_size,), dtype=jnp.float32,
                           minval=-bound, maxval=bound)

    out = eca_forward(x, w)
    jax.block_until_ready(out)

    ref = eca_reference(x, w)
    assert out.shape == x.shape and out.dtype == x.dtype
    assert jnp.allclose(out, ref, atol=1e-5, rtol=1e-5), "mismatch vs reference"

    print("KERNEL_OK")
</pallas_src>

<mosaic_0001>
module attributes {stable_mosaic.version = 11 : i64} {
  func.func @_eca_kernel(%arg0: i32, %arg1: memref<3xf32, #tpu.memory_space<smem>>, %arg2: memref<1x16x256xf32, #tpu.memory_space<vmem>>, %arg3: memref<1x16x256xf32, #tpu.memory_space<vmem>>) attributes {dimension_semantics = [#tpu.dimension_semantics<parallel>], iteration_bounds = array<i64: 2>, scalar_prefetch = 0 : i64, scratch_operands = 0 : i64, tpu.core_type = #tpu.core_type<tc>, window_params = [{transform_indices = @transform_0, window_bounds = array<i64: 3>}, {transform_indices = @transform_1, window_bounds = array<i64: 1, 16, 256>}, {transform_indices = @transform_2, window_bounds = array<i64: 1, 16, 256>}]} {
    %c0 = arith.constant 0 : index
    %c0_0 = arith.constant 0 : index
    %c0_1 = arith.constant 0 : index
    %0 = vector.load %arg2[%c0, %c0_0, %c0_1] : memref<1x16x256xf32, #tpu.memory_space<vmem>>, vector<1x16x256xf32>
    %cst = arith.constant dense<0.000000e+00> : vector<1x16xf32>
    %1 = vector.multi_reduction <add>, %0, %cst [2] : vector<1x16x256xf32> to vector<1x16xf32>
    %cst_2 = arith.constant 3.906250e-03 : f32
    %2 = vector.broadcast %cst_2 : f32 to vector<1x16xf32>
    %3 = arith.mulf %1, %2 : vector<1x16xf32>
    %4 = tpu.iota {dimensions = array<i32: 1>} : vector<1x16xi32>
    %c1 = arith.constant 1 : index
    %5 = memref.load %arg1[%c1] : memref<3xf32, #tpu.memory_space<smem>>
    %6 = vector.broadcast %5 : f32 to vector<1x16xf32>
    %7 = arith.mulf %6, %3 : vector<1x16xf32>
    %c1_i32 = arith.constant 1 : i32
    %8 = tpu.dynamic_rotate %3 by %c1_i32 dim 1 : vector<1x16xf32>, i32 -> vector<1x16xf32>
    %c1_i32_3 = arith.constant 1 : i32
    %9 = tpu.dynamic_rotate %4 by %c1_i32_3 dim 1 : vector<1x16xi32>, i32 -> vector<1x16xi32>
    %c1_i32_4 = arith.constant 1 : i32
    %10 = vector.broadcast %c1_i32_4 : i32 to vector<1x16xi32>
    %11 = arith.addi %4, %10 : vector<1x16xi32>
    %12 = arith.cmpi eq, %9, %11 : vector<1x16xi32>
    %c2 = arith.constant 2 : index
    %13 = memref.load %arg1[%c2] : memref<3xf32, #tpu.memory_space<smem>>
    %14 = vector.broadcast %13 : f32 to vector<1x16xf32>
    %15 = arith.mulf %14, %8 : vector<1x16xf32>
    %cst_5 = arith.constant 0.000000e+00 : f32
    %16 = vector.broadcast %cst_5 : f32 to vector<1x16xf32>
    %17 = arith.select %12, %15, %16 : vector<1x16xi1>, vector<1x16xf32>
    %18 = arith.addf %7, %17 : vector<1x16xf32>
    %c1_i32_6 = arith.constant 1 : i32
    %19 = vector.broadcast %c1_i32_6 : i32 to vector<1x16xi32>
    %20 = arith.subi %4, %19 : vector<1x16xi32>
    %21 = arith.cmpi eq, %9, %20 : vector<1x16xi32>
    %c0_7 = arith.constant 0 : index
    %22 = memref.load %arg1[%c0_7] : memref<3xf32, #tpu.memory_space<smem>>
    %23 = vector.broadcast %22 : f32 to vector<1x16xf32>
    %24 = arith.mulf %23, %8 : vector<1x16xf32>
    %cst_8 = arith.constant 0.000000e+00 : f32
    %25 = vector.broadcast %cst_8 : f32 to vector<1x16xf32>
    %26 = arith.select %21, %24, %25 : vector<1x16xi1>, vector<1x16xf32>
    %27 = arith.addf %18, %26 : vector<1x16xf32>
    %c15_i32 = arith.constant 15 : i32
    %28 = tpu.dynamic_rotate %3 by %c15_i32 dim 1 : vector<1x16xf32>, i32 -> vector<1x16xf32>
    %c15_i32_9 = arith.constant 15 : i32
    %29 = tpu.dynamic_rotate %4 by %c15_i32_9 dim 1 : vector<1x16xi32>, i32 -> vector<1x16xi32>
    %c1_i32_10 = arith.constant 1 : i32
    %30 = vector.broadcast %c1_i32_10 : i32 to vector<1x16xi32>
    %31 = arith.addi %4, %30 : vector<1x16xi32>
    %32 = arith.cmpi eq, %29, %31 : vector<1x16xi32>
    %c2_11 = arith.constant 2 : index
    %33 = memref.load %arg1[%c2_11] : memref<3xf32, #tpu.memory_space<smem>>
    %34 = vector.broadcast %33 : f32 to vector<1x16xf32>
    %35 = arith.mulf %34, %28 : vector<1x16xf32>
    %cst_12 = arith.constant 0.000000e+00 : f32
    %36 = vector.broadcast %cst_12 : f32 to vector<1x16xf32>
    %37 = arith.select %32, %35, %36 : vector<1x16xi1>, vector<1x16xf32>
    %38 = arith.addf %27, %37 : vector<1x16xf32>
    %c1_i32_13 = arith.constant 1 : i32
    %39 = vector.broadcast %c1_i32_13 : i32 to vector<1x16xi32>
    %40 = arith.subi %4, %39 : vector<1x16xi32>
    %41 = arith.cmpi eq, %29, %40 : vector<1x16xi32>
    %c0_14 = arith.constant 0 : index
    %42 = memref.load %arg1[%c0_14] : memref<3xf32, #tpu.memory_space<smem>>
    %43 = vector.broadcast %42 : f32 to vector<1x16xf32>
    %44 = arith.mulf %43, %28 : vector<1x16xf32>
    %cst_15 = arith.constant 0.000000e+00 : f32
    %45 = vector.broadcast %cst_15 : f32 to vector<1x16xf32>
    %46 = arith.select %41, %44, %45 : vector<1x16xi1>, vector<1x16xf32>
    %47 = arith.addf %38, %46 : vector<1x16xf32>
    %48 = arith.negf %47 : vector<1x16xf32>
    %49 = math.exp %48 : vector<1x16xf32>
    %cst_16 = arith.constant 1.000000e+00 : f32
    %50 = vector.broadcast %cst_16 : f32 to vector<1x16xf32>
    %51 = arith.addf %50, %49 : vector<1x16xf32>
    %52 = arith.divf %50, %51 : vector<1x16xf32>
    %53 = vector.shape_cast %52 : vector<1x16xf32> to vector<1x16x1xf32>
    %54 = vector.broadcast %53 : vector<1x16x1xf32> to vector<1x16x256xf32>
    %55 = arith.mulf %0, %54 : vector<1x16x256xf32>
    %c0_17 = arith.constant 0 : index
    %c0_18 = arith.constant 0 : index
    %c0_19 = arith.constant 0 : index
    %56 = vector.load %arg3[%c0_17, %c0_18, %c0_19] : memref<1x16x256xf32, #tpu.memory_space<vmem>>, vector<1x16x256xf32>
    tpu.vector_store %arg3[%c0_17, %c0_18, %c0_19], %55 {strides = array<i32>} : memref<1x16x256xf32, #tpu.memory_space<vmem>>, vector<1x16x256xf32>,
    return
  }
  func.func @transform_0(%arg0: i32) -> i32 {
    %c0_i32 = arith.constant 0 : i32
    %c0_i32_0 = arith.constant 0 : i32
    return %c0_i32 : i32
  }
  func.func @transform_1(%arg0: i32) -> (i32, i32, i32) {
    %c0_i32 = arith.constant 0 : i32
    %c0_i32_0 = arith.constant 0 : i32
    %c0_i32_1 = arith.constant 0 : i32
    return %arg0, %c0_i32, %c0_i32_0 : i32, i32, i32
  }
  func.func @transform_2(%arg0: i32) -> (i32, i32, i32) {
    %c0_i32 = arith.constant 0 : i32
    %c0_i32_0 = arith.constant 0 : i32
    %c0_i32_1 = arith.constant 0 : i32
    return %arg0, %c0_i32, %c0_i32_0 : i32, i32, i32
  }
}

</mosaic_0001>

<bundles_post_ra>
// kernel: tpu_custom_call.1
= control target key start
LH: loop header
LB: loop body
LE: loop exit
PB: predicated region body
PF: predicated region fallthrough
CT: control target
= control target key end

     0   :  { %7 = vsyncpa [#allocation5], 0  ;;  %s907_s0 = inlined_call_operand.vmem [shape: f32[3], index: 0, kind: input, shape index: {}]   ;;  %s908_s1 = inlined_call_operand.hbm [shape: f32[2,16,256], index: 1, kind: input, shape index: {}, may-alias: {1,2}]   ;;  %s909_s2 = inlined_call_operand.hbm [shape: f32[2,16,256], index: 2, kind: output, shape index: {}, may-alias: {1,2}]  }
   0x1   :  { %8 = vsyncpa [#allocation3], 0 }
   0x2   :  { %10 = vsyncpa [#allocation3 + $0x1], 0 }
   0x3   :  { %11 = vsyncpa [#allocation4], 0 }
   0x4   :  { %13 = vsyncpa [#allocation4 + $0x1], 0  ;;  %s681_s9 = smov 0   ;;  %s683_s10 = smov 0  }
   0x5   :  { %s685_s11 = smov 0   ;;  %s687_s12 = smov 0  }
   0x6 LB: > { %s702_s13 = sadd.s32 4294967295, %s654_s12   ;;  %s442_s14 = sadd.s32 4294967294, %s654_s12   ;;  %s654_s12 = sphi %s687_s12, %s929_s12   ;;  %s650_s11 = sphi %s685_s11, %s928_s11   ;;  %s646_s10 = sphi %s683_s10, %s927_s10   ;;  %s642_s9 = sphi %s681_s9, %s926_s9  }
   0x7   : > { %s706_s15 = sadd.s32 1, %s654_s12   ;;  %s47_s16 = sadd.s32 1, %s650_s11 }
   0x8   : > { %s44_s17 = ssub.s32 %s654_s12, %s706_s15  ;;  %p54_p0 = scmp.ne.s32.totalorder %s650_s11, %s646_s10 }
   0x9   : > { %p45_p1 = scmp.eq.s32.totalorder %s44_s17, 0  ;;  %p55_p2 = scmp.eq.s32.totalorder %s654_s12, 0 }
   0xa   : > { %p60_p3 = scmp.ne.s32.totalorder %s646_s10, %s642_s9  ;;  %p911_p4 = scmp.eq.s32.totalorder %s702_s13, 0 }
   0xb   : > { %s718_s18 = scalar_select %p45_p1, %s650_s11, %s47_s16  }
   0xc   : > { %p720_p5 = por %p55_p2, %p54_p0  ;;  %p726_p6 = por %p911_p4, %p60_p3 }
   0xd   : > { %p84_p7 = scmp.eq.s32.totalorder %s702_s13, 1  ;;  %p90_p8 = scmp.eq.s32.totalorder %s442_s14, 1 }
   0xe   : > { %s914_s20 = scalar_select %p726_p6, 1, 0 }
   0xf   : > { %p443_p9 = scmp.ge.s32.totalorder %s654_s12, 1  ;;  %p97_p10 = scmp.lt.s32.totalorder %s654_s12, 3 }
  0x10   : > { %p733_p11 = por %p84_p7, %p54_p0  ;;  %p737_p12 = por %p90_p8, %p60_p3 }
  0x11   : > { %p741_p13 = pnand %p443_p9, %p97_p10  ;;  %s110_s26 = sshll.u32 %s907_s0, 4  ;;  %s111_s26 = int_to_ptr.vmem [resolvable:$true] %s110_s26 }
  0x12   : > { %s915_s21 = scalar_select %p733_p11, 1, 0 }
  0x13   : > { %s916_s22 = scalar_select %p737_p12, 1, 0 }
  0x14   : > { %p473_p1 = pneg %p741_p13  ;;  %p486_p2 = scmp.lt.s32.totalorder %s654_s12, 2 }
  0x15   : > { %s121_s28 = sand.u32 1, %s650_s11   ;;  %s539_s3 = scalar_lea.vmem %s111_s26, 16 }
  0x16   : > { %p754_p7 = pnand %p473_p1, %p911_p4  ;;  %p761_p3 = pnand %p486_p2, %p720_p5 }
  0x17   : > { %s446_s30 = sshll.u32 %s121_s28, 5  ;;  %p540_p8 = scmp.ne.s32.totalorder %s111_s26, %s539_s3 }
  0x18   : > { %p541_p9 = pneg %p754_p7  ;;  %p547_p12 = scmp.lt.s32.totalorder %s111_s26, %s111_s26 }
  0x19   : > { %p548_p11 = scmp.lt.s32.totalorder %s539_s3, %s539_s3 }
  0x1a   : > { %p542_p10 = pnand %p541_p9, %p540_p8 }
  0x1b   : > { %p549_p1 = por %p548_p11, %p547_p12 }
  0x1c   : > { %p543_p0 = pneg %p542_p10 }
  0x1e   : > { %p550_p4 = pnand %p549_p1, %p543_p0 }
  0x20   : > { %553 = shalt.err (!%p550_p4)
}
  0x21   : > { %s656_s4 = smov [#allocation2]   ;;  %s463_s5 = sshll.u32 %s654_s12, 9 }
  0x22   : > { %476 = dma.vmem_to_smem (!%p754_p7), %s111_s26, 16, %s656_s4, [#allocation5]  }
  0x23   : > { %s125_s6 = scalar_lea.vmem [#allocation6], %s446_s30  ;;  %s773_s16 = scalar_lea.hbm %s908_s1, %s463_s5 }
  0x24   : > { %s132_s7 = sshll.u32 %s125_s6, 4  ;;  %s777_s17 = scalar_lea.sflag [#allocation3], %s121_s28  ;;  %s775_s7 = int_to_ptr.vmem [resolvable:$true] %s132_s7 }
  0x25   : > { %s554_s19 = scalar_lea.hbm %s773_s16, 512  ;;  %p556_p5 = pneg %p761_p3 }
  0x26   : > { %p555_p4 = scmp.ne.s32.totalorder %s773_s16, %s554_s19  ;;  %s559_s26 = scalar_lea.hbm %s908_s1, 1024 }
  0x27   : > { %p560_p0 = scmp.lt.u32.totalorder %s773_s16, %s908_s1  ;;  %p561_p2 = scmp.lt.u32.totalorder %s559_s26, %s554_s19 }
  0x28   : > { %p557_p11 = pnand %p556_p5, %p555_p4  ;;  %p563_p8 = scmp.lt.u32.totalorder %s554_s19, %s773_s16 }
  0x29   : > { %p562_p7 = por %p561_p2, %p560_p0 }
  0x2a   : > { %p558_p12 = pneg %p557_p11 }
  0x2b   : > { %p564_p9 = por %p563_p8, %p562_p7 }
  0x2d   : > { %p565_p10 = pnand %p564_p9, %p558_p12 }
  0x2f   : > { %568 = shalt.err (!%p565_p10)
}
  0x30   : > { %s569_s28 = scalar_lea.vmem %s775_s7, 512  ;;  %s657_s3 = smov [#allocation6]  }
  0x31   : > { %p570_p1 = scmp.ne.s32.totalorder %s775_s7, %s569_s28  ;;  %s574_s4 = sshll.u32 %s657_s3, 4  ;;  %s575_s4 = int_to_ptr.vmem [resolvable:$false] %s574_s4 }
  0x32   : > { %s576_s5 = scalar_lea.vmem %s575_s4, 1024  ;;  %p577_p6 = scmp.lt.s32.totalorder %s775_s7, %s575_s4 }
  0x33   : > { %p572_p4 = pnand %p570_p1, %p556_p5  ;;  %p578_p0 = scmp.lt.s32.totalorder %s576_s5, %s569_s28 }
  0x35   : > { %p573_p11 = pneg %p572_p4  ;;  %p579_p2 = por %p578_p0, %p577_p6 }
  0x37   : > { %p580_p7 = pnand %p579_p2, %p573_p11 }
  0x39   : > { %583 = shalt.err (!%p580_p7)
}
  0x3a   : > { %s658_s6 = smov 256   ;;  %s659_s8 = smov 16  }
  0x3b   : > { %480 = dma.hbm_to_vmem [thread:$0]  (!%p761_p3), %s773_s16, 512, %s775_s7, %s777_s17, %s658_s6, %s658_s6, %s659_s8  }
  0x3c   : > { %144 = sbr.rel (%p741_p13) target bundleno = 772 (0x304), region = 28  ;;  %p920_p5 = scmp.eq.s32.totalorder (!%p741_p13), %s702_s13, 0 }
  0x43   : > { %629 = dma.done.wait (%p920_p5), [#allocation5], 16   ;;  %p921_p12 = pmov %p920_p5 }
  0x44   : > { %s812_s14 = sand.u32 1, %s646_s10   ;;  %p922_p6 = scmp.ne.s32.totalorder %s914_s20, 0 }
  0x45   : > { %631 = vsyncadd (%p921_p12), [#allocation5], 4294967280  ;;  %s451_s19 = sshll.u32 %s812_s14, 5  ;;  %s151_s24 = scalar_lea.sflag [#allocation3], %s812_s14 }
  0x46   : > { %s154_s29 = scalar_lea.vmem [#allocation6], %s451_s19 }
  0x47   : > { %633 = dma.done.wait (%p922_p6), %s151_s24, 512  }
  0x48   : > { %635 = vsyncadd (%p922_p6), %s151_s24, 4294966784 }
  0x49   : > { %159 = sfence }
  0x4a   : > { %v822_v0 = vld [vmem:[%s154_s29] sm:$0xff]  ;;  %v824_v1 = vld [vmem:[%s154_s29 + $0x8] sm:$0xff]  ;;  %v826_v2 = vld [vmem:[%s154_s29 + $0x10] sm:$0xff]  ;;  %v188_v6 = vlaneseq  ;;  %vm205_vm0 = vcmask 130112   ;;  %s660_s20 = smov 16   ;;  %vm208_vm1 = vcmask 1047680  }
  0x4b   : > { %v180_v3 = vadd.f32 %v824_v1, %v822_v0  ;;  %v830_v4 = vld [vmem:[%s154_s29 + $0x18] sm:$0xff]  ;;  %s661_s23 = smov 15   ;;  %s662_s7 = smov 1   ;;  %v663_v46 = vmov 0  }
  0x4c   : > { %v183_v5 = vadd.f32 %v830_v4, %v826_v2  ;;  %v189_v7 = vand.u32 127, %v188_v6  ;;  %v197_v8 = vshrl.u32 %v188_v6, 7  ;;  %s454_s16 = sld [smem:[#allocation2 + $0x2]]  ;;  %s250_s17 = sld [smem:[#allocation2]]  ;;  %530 = vset.pattern.permute.xlu0 %v663_v46  ;;  %529 = vset.pattern.permute.xlu1 %v663_v46 }
  0x4d   : > { %181 = vadd.xlane.f32.xlu0 %v180_v3  ;;  %s453_s25 = sld [smem:[#allocation2 + $0x1]]  ;;  %s175_s26 = scalar_lea.vmem [#allocation7], %s451_s19 }
  0x4e   : > { %v200_v9 = vadd.s32 4294967288, %v189_v7  ;;  %v198_v11 = vsub.s32 %v189_v7, %v197_v8  ;;  %v221_v23 = vadd.s32 1, %v189_v7  ;;  %v455_v24 = vadd.s32 4294967295, %v189_v7  ;;  %s357_s27 = sshll.u32 %s175_s26, 4  ;;  %s464_s30 = sshll.u32 %s702_s13, 9  ;;  %s853_s27 = int_to_ptr.vmem [resolvable:$true] %s357_s27 }
  0x4f   : > { %v232_v29 = vsub.s32 0, %v197_v8  ;;  %s862_s13 = scalar_lea.hbm %s909_s2, %s464_s30  ;;  %s344_s4 = scalar_lea.sflag [#allocation4], %s812_s14 }
  0x50   : > { %v203_v13 = vsub.s32 %v200_v9, %v197_v8  ;;  %s584_s5 = scalar_lea.vmem %s853_s27, 512  ;;  %p923_p3 = scmp.ne.s32.totalorder %s915_s21, 0 }
  0x51   : > { %184 = vadd.xlane.f32.xlu0 %v183_v5  ;;  %p585_p13 = scmp.ne.s32.totalorder %s853_s27, %s584_s5  ;;  %s664_s6 = smov [#allocation7]  }
  0x52   : > { %v226_v27 = vstv %s454_s16  ;;  %v251_v33 = vstv %s250_s17  ;;  %s588_s8 = sshll.u32 %s664_s6, 4  ;;  %s589_s8 = int_to_ptr.vmem [resolvable:$false] %s588_s8 }
  0x53   : > { %v191_v49 = vstv %s453_s25  ;;  %p586_p8 = pnand %p585_p13, %p923_p3  ;;  %s590_s19 = scalar_lea.vmem %s589_s8, 1024 }
  0x54   : > { %p591_p10 = scmp.lt.s32.totalorder %s853_s27, %s589_s8  ;;  %p592_p1 = scmp.lt.s32.totalorder %s590_s19, %s584_s5 }
  0x55   : > { %p587_p9 = pneg %p586_p8 }
  0x56   : > { %p593_p4 = por %p592_p1, %p591_p10 }
  0x58   : > { %p594_p11 = pnand %p593_p4, %p587_p9 }
  0xda   : > { %v182_v10 = vpop.xlane.xlu0 %181 }
  0xdb   : > { %v834_v12 = vmul.f32 0.00390625, %v182_v10 }
  0xdd   : > { %v199_v16 = vrot.slane %v834_v12, %v198_v11  ;;  %v192_v53 = vmul.f32 %v191_v49, %v834_v12 }
  0xde   : > { %v185_v14 = vpop.xlane.xlu0 %184 }
  0xdf   : > { %v836_v15 = vmul.f32 0.00390625, %v185_v14 }
  0xe1   : > { %v204_v17 = vrot.slane %v836_v15, %v203_v13  ;;  %v193_v52 = vmul.f32 %v191_v49, %v836_v15 }
  0xe3   : > { %v206_v18 = vsel %vm205_vm0, %v204_v17, %v199_v16 }
  0xe4   : > { %209 = vrot.lane.b32.xlu1 %v206_v18, %s660_s20 }
  0xe8   : > { %215 = vrot.lane.b32.xlu1 %v189_v7, %s660_s20 }
 0x156   : > { %v210_v19 = vpop.permute.xlu1 %209 }
 0x157   : > { %v211_v20 = vsel %vm208_vm1, %v210_v19, %v206_v18 }
 0x158   : > { %212 = vrot.lane.b32.xlu0 %v211_v20, %s660_s20 }
 0x15a   : > { %v216_v21 = vpop.permute.xlu1 %215 }
 0x15b   : > { %v217_v22 = vsel %vm208_vm1, %v216_v21, %v189_v7 }
 0x15c   : > { %218 = vrot.lane.b32.xlu1 %v217_v22, %s660_s20 }
 0x160   : > { %222 = vrot.lane.b32.xlu1 %v221_v23, %s661_s23 }
 0x164   : > { %247 = vrot.lane.b32.xlu1 %v455_v24, %s661_s23 }
 0x168   : > { %271 = vrot.lane.b32.xlu1 %v221_v23, %s662_s7 }
 0x16c   : > { %292 = vrot.lane.b32.xlu1 %v455_v24, %s662_s7 }
 0x1ca   : > { %v213_v25 = vpop.permute.xlu0 %212 }
 0x1cb   : > { %v214_v28 = vsel %vm208_vm1, %v213_v25, %v206_v18 }
 0x1cc   : > { %v227_v30 = vmul.f32 %v226_v27, %v214_v28  ;;  %v252_v36 = vmul.f32 %v251_v33, %v214_v28 }
 0x1ce   : > { %v219_v26 = vpop.permute.xlu1 %218 }
 0x1cf   : > { %v220_v31 = vsel %vm208_vm1, %v219_v26, %v189_v7 }
 0x1d2   : > { %v223_v32 = vpop.permute.xlu1 %222 }
 0x1d3   : > { %vm224_vm2 = vcmp.eq.s32.totalorder %v220_v31, %v223_v32 }
 0x1d4   : > { %v228_v34 = vsel %vm224_vm2, %v227_v30, 0.0 }
 0x1d5   : > { %v233_v35 = vrot.slane %v228_v34, %v232_v29 }
 0x1d6   : > { %v248_v37 = vpop.permute.xlu1 %247 }
 0x1d7   : > { %vm249_vm3 = vcmp.eq.s32.totalorder %v220_v31, %v248_v37  ;;  %240 = vbcast.lane.b32.xlu0 %v233_v35, 279  ;;  %236 = vbcast.lane.b32.xlu1 %v233_v35, 271 }
 0x1d8   : > { %v253_v38 = vsel %vm249_vm3, %v252_v36, 0.0 }
 0x1d9   : > { %v258_v39 = vrot.slane %v253_v38, %v232_v29 }
 0x1da   : > { %v272_v40 = vpop.permute.xlu1 %271 }
 0x1db   : > { %vm273_vm4 = vcmp.eq.s32.totalorder %v220_v31, %v272_v40  ;;  %265 = vbcast.lane.b32.xlu0 %v258_v39, 279  ;;  %261 = vbcast.lane.b32.xlu1 %v258_v39, 271 }
 0x1dc   : > { %v274_v41 = vsel %vm273_vm4, %v227_v30, 0.0 }
 0x1dd   : > { %v279_v42 = vrot.slane %v274_v41, %v232_v29 }
 0x1de   : > { %v293_v43 = vpop.permute.xlu1 %292 }
 0x1df   : > { %vm294_vm5 = vcmp.eq.s32.totalorder %v220_v31, %v293_v43  ;;  %286 = vbcast.lane.b32.xlu0 %v279_v42, 265  ;;  %282 = vbcast.lane.b32.xlu1 %v279_v42, 257 }
 0x1e0   : > { %v295_v44 = vsel %vm294_vm5, %v252_v36, 0.0 }
 0x1e1   : > { %v300_v45 = vrot.slane %v295_v44, %v232_v29 }
 0x1e3   : > { %307 = vbcast.lane.b32.xlu0 %v300_v45, 265  ;;  %303 = vbcast.lane.b32.xlu1 %v300_v45, 257 }
 0x249   : > { %v241_v47 = vpop.permute.xlu0 %240  ;;  %v237_v48 = vpop.permute.xlu1 %236 }
 0x24a   : > { %v245_v54 = vadd.f32 %v241_v47, %v193_v52  ;;  %v244_v55 = vadd.f32 %v237_v48, %v192_v53 }
 0x24d   : > { %v266_v50 = vpop.permute.xlu0 %265  ;;  %v262_v51 = vpop.permute.xlu1 %261 }
 0x24e   : > { %v270_v58 = vadd.f32 %v266_v50, %v245_v54  ;;  %v269_v59 = vadd.f32 %v262_v51, %v244_v55 }
 0x251   : > { %v287_v56 = vpop.permute.xlu0 %286  ;;  %v283_v57 = vpop.permute.xlu1 %282 }
 0x252   : > { %v291_v60 = vadd.f32 %v287_v56, %v270_v58  ;;  %v290_v61 = vadd.f32 %v283_v57, %v269_v59 }
 0x255   : > { %v308_v62 = vpop.permute.xlu0 %307  ;;  %v304_v63 = vpop.permute.xlu1 %303 }
 0x256   : > { %v312_v3 = vadd.f32 %v308_v62, %v291_v60  ;;  %v311_v5 = vadd.f32 %v304_v63, %v290_v61 }
 0x258   : > { %v457_v6 = vmul.f32 -1.442695, %v312_v3  ;;  %v456_v7 = vmul.f32 -1.442695, %v311_v5 }
 0x25a   : > { %531 = vpow2.f32 %v457_v6 }
 0x25b   : > { %533 = vpow2.f32 %v456_v7 }
 0x264   : > { %v532_v8 = vpop.eup %531 }
 0x265   : > { %v534_v9 = vpop.eup %533  ;;  %v320_v10 = vadd.f32 1.0, %v532_v8 }
 0x266   : > { %v319_v11 = vadd.f32 1.0, %v534_v9 }
 0x267   : > { %535 = vrcp.f32 %v320_v10 }
 0x268   : > { %537 = vrcp.f32 %v319_v11 }
 0x271   : > { %v536_v12 = vpop.eup %535 }
 0x272   : > { %v538_v13 = vpop.eup %537  ;;  %332 = vperm.xlu0 %530, %v536_v12  }
 0x273   : > { %327 = vperm.xlu1 %529, %v538_v13  }
 0x2f1   : > { %v333_v14 = vpop.permute.xlu0 %332 }
 0x2f2   : > { %v328_v15 = vpop.permute.xlu1 %327  ;;  %v337_v16 = vmul.f32 %v333_v14, %v826_v2  ;;  %v338_v17 = vmul.f32 %v333_v14, %v830_v4 }
 0x2f3   : > { %v335_v18 = vmul.f32 %v328_v15, %v822_v0  ;;  %v336_v19 = vmul.f32 %v328_v15, %v824_v1 }
 0x2f4   : > { %341 = vst [vmem:[%s175_s26 + $0x10] sm:$0xff] %v337_v16  ;;  %342 = vst [vmem:[%s175_s26 + $0x18] sm:$0xff] %v338_v17 }
 0x2f5   : > { %339 = vst [vmem:[%s175_s26] sm:$0xff] %v335_v18  ;;  %340 = vst [vmem:[%s175_s26 + $0x8] sm:$0xff] %v336_v19 }
 0x2f6   : > { %597 = shalt.err (!%p594_p11)
}
 0x2f7   : > { %s598_s24 = scalar_lea.hbm %s862_s13, 512  ;;  %s602_s7 = scalar_lea.hbm %s909_s2, 1024 }
 0x2f8   : > { %p599_p0 = scmp.ne.s32.totalorder %s862_s13, %s598_s24  ;;  %p603_p5 = scmp.lt.u32.totalorder %s862_s13, %s909_s2 }
 0x2f9   : > { %p604_p12 = scmp.lt.u32.totalorder %s602_s7, %s598_s24  ;;  %p606_p13 = scmp.lt.u32.totalorder %s598_s24, %s862_s13 }
 0x2fa   : > { %p600_p2 = pnand %p599_p0, %p923_p3 }
 0x2fb   : > { %p605_p6 = por %p604_p12, %p603_p5 }
 0x2fc   : > { %p601_p7 = pneg %p600_p2 }
 0x2fd   : > { %p607_p8 = por %p606_p13, %p605_p6 }
 0x2ff   : > { %p608_p9 = pnand %p607_p8, %p601_p7 }
 0x301   : > { %611 = shalt.err (!%p608_p9)
}
 0x302   : > { %s665_s25 = smov 256  }
 0x303   : > { %471 = dma.vmem_to_hbm [thread:$0]  (%p923_p3), %s853_s27, 512, %s862_s13, %s344_s4, %s665_s25, %s665_s25, %s660_s20  }
 0x304 PF: > { %s372_s26 = sand.u32 1, %s642_s9   ;;  %p924_p10 = scmp.ne.s32.totalorder %s916_s22, 0 }
 0x305   : > { %p925_p1 = scmp.ge.s32.totalorder %s654_s12, 2  ;;  %s373_s30 = scalar_lea.sflag [#allocation4], %s372_s26 }
 0x307   : > { %p482_p4 = pnand %p925_p1, %p924_p10 }
 0x309   : > { %637 = dma.done.wait (!%p482_p4), %s373_s30, 512  }
 0x30a   : > { %639 = vsyncadd (!%p482_p4), %s373_s30, 4294966784  ;;  %p16_p11 = scmp.ge.s32.totalorder %s706_s15, 4   ;;  %s926_s9 = smov %s646_s10 }
 0x30b   : > { %s927_s10 = smov %s650_s11  ;;  %s928_s11 = smov %s718_s18 }
 0x30c   : > { %s929_s12 = smov %s706_s15  ;;  %18 = sbr.rel (!%p16_p11) target bundleno = 6 (0x6), region = 78 }
 0x313   :  { %378 = vsyncpa [#allocation3], 1 }
 0x314   :  { %380 = vsyncpa [#allocation3 + $0x1], 1 }
 0x315   :  { %381 = vsyncpa [#allocation4], 1 }
 0x316   :  { %383 = vsyncpa [#allocation4 + $0x1], 1 }
 0x317   :  { %384 = vsyncpa [#allocation5], 1 }
 0x318   :  { %386 = vsyncpa [#allocation5 + $0x1], 1 }

</bundles_post_ra>
